<compile_context>
chip_gen: v6e
topology: v6e:2x2x1
jax: 0.10.0
libtpu: 0.0.40
codegen_flags: <defaults>
</compile_context>

<pallas_src>
import functools

import jax
import jax.numpy as jnp
from jax.experimental import pallas as pl
from jax.experimental.pallas import tpu as pltpu


# ----------------------------- Pallas kernel ------------------------------ #
def _pointwise_conv_kernel(x_ref, w_ref, b_ref, o_ref):
    # x_ref: (1, C_in, tm)   w_ref: (C_out, C_in)   b_ref: (C_out, 1)
    # o_ref: (1, C_out, tm)
    x = x_ref[0]                                                    # (C_in, tm)
    acc = jnp.dot(w_ref[...], x, preferred_element_type=jnp.float32)  # (C_out, tm)
    o_ref[0] = (acc + b_ref[...]).astype(o_ref.dtype)


def pointwise_conv_bias(x3, w_mat, b_col, *, tm_target=32768):
    """Lane-dense pointwise (1x1x1) conv + bias.

    x3:    (N, C_in, S)  channels-first, spatial flattened in the lane axis
    w_mat: (C_out, C_in)
    b_col: (C_out, 1)
    returns (N, C_out, S)
    """
    N, c_in, S = x3.shape
    c_out = w_mat.shape[0]

    # Whole volume per step if it fits; otherwise 128-aligned tiles.
    # (Pallas masks the ragged last block, so no jnp.pad copy is needed.)
    tm = S if S <= tm_target else tm_target
    grid = (N, pl.cdiv(S, tm))

    return pl.pallas_call(
        _pointwise_conv_kernel,
        out_shape=jax.ShapeDtypeStruct((N, c_out, S), x3.dtype),
        grid_spec=pltpu.PrefetchScalarGridSpec(
            num_scalar_prefetch=0,
            grid=grid,
            in_specs=[
                pl.BlockSpec((1, c_in, tm), lambda n, s: (n, 0, s)),
                pl.BlockSpec((c_out, c_in), lambda n, s: (0, 0)),
                pl.BlockSpec((c_out, 1), lambda n, s: (0, 0)),
            ],
            out_specs=pl.BlockSpec((1, c_out, tm), lambda n, s: (n, 0, s)),
        ),
        compiler_params=pltpu.CompilerParams(
            dimension_semantics=("parallel", "parallel"),
            # Above v5e's 16 MiB default scoped limit, comfortably below
            # v7x's 64 MiB physical VMEM.  Block footprint here is only a
            # few MiB even double-buffered.
            vmem_limit_bytes=32 * 1024 * 1024,
        ),
    )(x3, w_mat, b_col)


# ------------------------- Trilinear upsample glue ------------------------- #
def _interp_matrix(in_size, out_size):
    """Exact 1-D linear-interp matrix (out_size, in_size), align_corners=True.
    Rows sum to 1 (this is what makes conv/upsample commute with the bias)."""
    if out_size == 1:
        src = jnp.zeros((1,), dtype=jnp.float32)
    else:
        src = jnp.arange(out_size, dtype=jnp.float32) * (in_size - 1) / (out_size - 1)
    i0 = jnp.clip(jnp.floor(src).astype(jnp.int32), 0, in_size - 1)
    i1 = jnp.clip(i0 + 1, 0, in_size - 1)
    frac = src - i0.astype(jnp.float32)
    rows = jnp.arange(out_size)
    W = jnp.zeros((out_size, in_size), dtype=jnp.float32)
    W = W.at[rows, i0].add(1.0 - frac)
    W = W.at[rows, i1].add(frac)
    return W


def trilinear_upsample_align_corners(x, scale=(2, 2, 2)):
    """x: (N, C, D, H, W) -> (N, C, sD*D, sH*H, sW*W); matches torch trilinear
    align_corners=True (separable exact linear interpolation, f32)."""
    N, C, D, H, W = x.shape
    D2, H2, W2 = D * scale[0], H * scale[1], W * scale[2]
    Wd = _interp_matrix(D, D2)
    Wh = _interp_matrix(H, H2)
    Ww = _interp_matrix(W, W2)
    hi = jax.lax.Precision.HIGHEST
    x = jnp.einsum('ncdhw,Ed->ncEhw', x, Wd, precision=hi)   # depth
    x = jnp.einsum('ncdhw,Fh->ncdFw', x, Wh, precision=hi)   # height
    x = jnp.einsum('ncdhw,Gw->ncdhG', x, Ww, precision=hi)   # width
    return x.astype(x.dtype)


# ------------------------------ Module wrapper ----------------------------- #
@functools.partial(jax.jit, static_argnames=("scale",))
def upsample_conv_forward(x, conv_w, conv_b, scale=(2, 2, 2)):
    """UpsampleConv.forward (norm_type=None, activation=False, conv='conv').
    x:      (N, C_in, D, H, W)        [NCDHW, like PyTorch]
    conv_w: (C_out, C_in, 1, 1, 1)    [PyTorch Conv3d weight layout]
    conv_b: (C_out,)
    returns (N, C_out, sD*D, sH*H, sW*W)
    """
    N, C_in, D, H, W = x.shape
    C_out = conv_w.shape[0]
    w_mat = conv_w.reshape(C_out, C_in)
    b_col = conv_b.reshape(C_out, 1)

    # 1x1x1 conv FIRST (commutes exactly with the align_corners upsample):
    # channels-first layout is already lane-dense, so only free reshapes.
    x3 = x.reshape(N, C_in, D * H * W)
    z3 = pointwise_conv_bias(x3, w_mat, b_col)            # (N, C_out, D*H*W)
    z = z3.reshape(N, C_out, D, H, W)

    # Separable trilinear upsample on the (smaller-channel-count) conv output.
    return trilinear_upsample_align_corners(z, scale)


# ---------------------------------- Main ----------------------------------- #
if __name__ == "__main__":
    key = jax.random.PRNGKey(0)
    kx, kw, kb = jax.random.split(key, 3)

    # Small shapes: batch=2, in_features=4, out_features=8, spatial=8^3
    N, C_in, C_out = 2, 4, 8
    D = H = W = 8
    scale = (2, 2, 2)

    x = jax.random.normal(kx, (N, C_in, D, H, W), dtype=jnp.float32)

    # Deterministic synthetic Conv3d(1x1x1) params (PyTorch-style uniform bound)
    bound = 1.0 / jnp.sqrt(float(C_in))  # fan_in = C_in * 1 * 1 * 1
    conv_w = jax.random.uniform(kw, (C_out, C_in, 1, 1, 1),
                                minval=-bound, maxval=bound, dtype=jnp.float32)
    conv_b = jax.random.uniform(kb, (C_out,),
                                minval=-bound, maxval=bound, dtype=jnp.float32)

    y = upsample_conv_forward(x, conv_w, conv_b, scale=scale)
    jax.block_until_ready(y)
    assert y.shape == (N, C_out, 2 * D, 2 * H, 2 * W), y.shape

    # Sanity reference in the ORIGINAL module order (upsample, then conv+bias).
    x_up = trilinear_upsample_align_corners(x, scale)
    y_ref = jnp.einsum('oc,ncdhw->nodhw', conv_w.reshape(C_out, C_in), x_up,
                       precision=jax.lax.Precision.HIGHEST)
    y_ref = y_ref + conv_b[None, :, None, None, None]
    max_err = float(jnp.max(jnp.abs(y - y_ref)))
    assert jnp.allclose(y, y_ref, atol=1e-2, rtol=1e-2), max_err

    print("KERNEL_OK")
</pallas_src>

<mosaic_0001>
module attributes {stable_mosaic.version = 11 : i64} {
  func.func private @main(%arg0: i32) attributes {dimension_semantics = [#tpu.dimension_semantics<core_parallel>], iteration_bounds = array<i64: 2>, tpu.core_type = #tpu.core_type<sc_scalar_subcore>, window_params = []} {
    return
  }
}

module attributes {stable_mosaic.version = 11 : i64} {
  func.func private @main(%arg0: i32) attributes {dimension_semantics = [#tpu.dimension_semantics<core_parallel>], iteration_bounds = array<i64: 2>, tpu.core_type = #tpu.core_type<sc_scalar_subcore>, window_params = []} {
    return
  }
}

module attributes {stable_mosaic.version = 11 : i64} {
  func.func @_pointwise_conv_kernel(%arg0: i32, %arg1: i32, %arg2: memref<1x4x512xf32, #tpu.memory_space<vmem>>, %arg3: memref<8x4xf32, #tpu.memory_space<vmem>>, %arg4: memref<8x1xf32, #tpu.memory_space<vmem>>, %arg5: memref<1x8x512xf32, #tpu.memory_space<vmem>>) attributes {dimension_semantics = [#tpu.dimension_semantics<parallel>, #tpu.dimension_semantics<parallel>], iteration_bounds = array<i64: 2, 1>, scalar_prefetch = 0 : i64, scratch_operands = 0 : i64, tpu.core_type = #tpu.core_type<tc>, window_params = [{transform_indices = @transform_0, window_bounds = array<i64: 1, 4, 512>}, {pipeline_mode = #tpu.pipeline_mode<synchronous>, transform_indices = @transform_1, window_bounds = array<i64: 8, 4>}, {pipeline_mode = #tpu.pipeline_mode<synchronous>, transform_indices = @transform_2, window_bounds = array<i64: 8, 1>}, {transform_indices = @transform_3, window_bounds = array<i64: 1, 8, 512>}]} {
    %c0 = arith.constant 0 : index
    %c0_0 = arith.constant 0 : index
    %c0_1 = arith.constant 0 : index
    %0 = vector.load %arg2[%c0, %c0_0, %c0_1] : memref<1x4x512xf32, #tpu.memory_space<vmem>>, vector<1x4x512xf32>
    %1 = vector.shape_cast %0 : vector<1x4x512xf32> to vector<4x512xf32>
    %c0_2 = arith.constant 0 : index
    %c0_3 = arith.constant 0 : index
    %2 = vector.load %arg3[%c0_2, %c0_3] : memref<8x4xf32, #tpu.memory_space<vmem>>, vector<8x4xf32>
    %cst = arith.constant dense<0.000000e+00> : vector<8x512xf32>
    %3 = tpu.matmul %2, %1, %cst {dimension_numbers = #tpu.dot_dimension_numbers<[1], [0], [0], [1], [0, 0, 1, 1], [], []>} : vector<8x4xf32>, vector<4x512xf32>, vector<8x512xf32> -> vector<8x512xf32>
    %c0_4 = arith.constant 0 : index
    %c0_5 = arith.constant 0 : index
    %4 = vector.load %arg4[%c0_4, %c0_5] : memref<8x1xf32, #tpu.memory_space<vmem>>, vector<8x1xf32>
    %5 = vector.broadcast %4 : vector<8x1xf32> to vector<8x512xf32>
    %6 = arith.addf %3, %5 : vector<8x512xf32>
    %c0_6 = arith.constant 0 : index
    %c0_7 = arith.constant 0 : index
    %c0_8 = arith.constant 0 : index
    %7 = vector.load %arg5[%c0_6, %c0_7, %c0_8] : memref<1x8x512xf32, #tpu.memory_space<vmem>>, vector<1x8x512xf32>
    %8 = vector.shape_cast %7 : vector<1x8x512xf32> to vector<8x512xf32>
    %9 = vector.shape_cast %6 : vector<8x512xf32> to vector<1x8x512xf32>
    tpu.vector_store %arg5[%c0_6, %c0_7, %c0_8], %9 {strides = array<i32>} : memref<1x8x512xf32, #tpu.memory_space<vmem>>, vector<1x8x512xf32>,
    return
  }
  func.func @transform_0(%arg0: i32, %arg1: i32) -> (i32, i32, i32) {
    %c0_i32 = arith.constant 0 : i32
    %c0_i32_0 = arith.constant 0 : i32
    return %arg0, %c0_i32, %arg1 : i32, i32, i32
  }
  func.func @transform_1(%arg0: i32, %arg1: i32) -> (i32, i32) {
    %c0_i32 = arith.constant 0 : i32
    %c0_i32_0 = arith.constant 0 : i32
    %c0_i32_1 = arith.constant 0 : i32
    return %c0_i32, %c0_i32_0 : i32, i32
  }
  func.func @transform_2(%arg0: i32, %arg1: i32) -> (i32, i32) {
    %c0_i32 = arith.constant 0 : i32
    %c0_i32_0 = arith.constant 0 : i32
    %c0_i32_1 = arith.constant 0 : i32
    return %c0_i32, %c0_i32_0 : i32, i32
  }
  func.func @transform_3(%arg0: i32, %arg1: i32) -> (i32, i32, i32) {
    %c0_i32 = arith.constant 0 : i32
    %c0_i32_0 = arith.constant 0 : i32
    return %arg0, %c0_i32, %arg1 : i32, i32, i32
  }
}

</mosaic_0001>

<bundles_post_ra>
// kernel: upsample_conv_forward.1
= control target key start
LH: loop header
LB: loop body
LE: loop exit
PB: predicated region body
PF: predicated region fallthrough
CT: control target
= control target key end

     0   :  { %s563_s12 = smov 0   ;;  %s565_s13 = smov 0   ;;  %s602_s0 = inlined_call_operand.vmem [shape: f32[2,4,512], index: 0, kind: input, shape index: {}]   ;;  %s603_s1 = inlined_call_operand.vmem [shape: f32[8,4], index: 1, kind: input, shape index: {}]   ;;  %s604_s2 = inlined_call_operand.vmem [shape: f32[8,1], index: 2, kind: input, shape index: {}]   ;;  %s605_s3 = inlined_call_operand.vmem [shape: f32[2,8,512], index: 3, kind: output, shape index: {}]  }
   0x1   :  { %s567_s14 = smov 0  }
   0x2 LB: > { %s25_s15 = sadd.s32 1, %s535_s13  ;;  %p473_p0 = scmp.ge.s32.totalorder %s539_s14, 1  ;;  %s539_s14 = sphi %s567_s14, %s13_s14   ;;  %s535_s13 = sphi %s565_s13, %s607_s13   ;;  %s531_s12 = sphi %s563_s12, %s606_s12  }
   0x3   : > { %p27_p1 = scmp.ge.s32.totalorder %s25_s15, 2  ;;  %p158_p2 = scmp.lt.s32.totalorder %s539_s14, 3 }
   0x5   : > { %s609_s15 = smov (%p27_p1, %s25_s15), 0  ;;  %p159_p3 = pnand %p473_p0, %p158_p2 }
   0x6   : > { %p191_p4 = scmp.lt.s32.totalorder (!%p159_p3), %s531_s12, 1 }
   0x7   : > { %162 = sbr.rel (%p159_p3) target bundleno = 218 (0xda), region = 32 }
   0xc   : > { %v541_v0 = vmov 0.0   ;;  %v213_v1 = vld [vmem:[%s604_s2] sm:$0xff]  ;;  %s611_s12 = smov (!%p191_p4, %s531_s12), 1  ;;  %v542_v2 = vmov 0   ;;  %vm227_vm0 = vcmask 1043456   ;;  %vm223_vm1 = vcmask 31744  }
   0xd   : > { %300 = vmatprep.mubr.f32.mxu0 %v541_v0  ;;  %371 = vmatprep.mubr.f32.mxu1 %v541_v0  ;;  %s486_s18 = sshll.u32 %s611_s12, 4  ;;  %v212_v7 = vld [vmem:[%s603_s1] sm:$0xff]  ;;  %s487_s24 = sshll.u32 %s611_s12, 5 }
   0xe   : > { %514 = vset.pattern.permute.xlu0 %v542_v2  ;;  %s198_s21 = scalar_lea.vmem %s602_s0, %s486_s18  ;;  %s208_s27 = scalar_lea.vmem %s605_s3, %s487_s24 }
   0xf   : > { %216 = vperm.xlu0 %514, %v213_v1   ;;  %v210_v3 = vld [vmem:[%s198_s21] sm:$0xff]  ;;  %v211_v4 = vld [vmem:[%s198_s21 + $0x8] sm:$0xff] }
  0x10   : > { %v221_v5 = vcombine.high %v210_v3, %v210_v3  ;;  %v222_v6 = vcombine.high %v211_v4, %v211_v4 }
  0x12   : > { %478 = vmatprep.subr.msk.mxu0 %vm227_vm0, %v221_v5  ;;  %481 = vmatprep.subr.msk.mxu1 %vm227_vm0, %v222_v6 }
  0x13   : > { %479 = vmatpush1.msk.msra.mxu0 %vm227_vm0, %v210_v3  ;;  %482 = vmatpush1.msk.msra.mxu1 %vm227_vm0, %v211_v4 }
  0x14   : > { %480 = vmatmul.mubr.msk.f32.vlgmr.msra.gmra.mxu0 %vm223_vm1, %v212_v7  ;;  %483 = vmatmul.mubr.msk.f32.vlgmr.msra.gmra.mxu1 %vm223_vm1, %v212_v7 }
  0x8a   : > { %v217_v8 = vpop.permute.xlu0 %216 }
  0xd4   : > { %v302_v9 = vpop.f32.mrf.mxu0  ;;  %v373_v10 = vpop.f32.mrf.mxu1 }
  0xd5   : > { %v303_v11 = vadd.f32 %v302_v9, %v217_v8  ;;  %v374_v12 = vadd.f32 %v373_v10, %v217_v8 }
  0xd6   : > { %v304_v13 = vpop.f32.mrf.mxu0  ;;  %v375_v14 = vpop.f32.mrf.mxu1 }
  0xd7   : > { %378 = vst [vmem:[%s208_s27] sm:$0xff] %v303_v11  ;;  %380 = vst [vmem:[%s208_s27 + $0x10] sm:$0xff] %v374_v12  ;;  %v305_v15 = vadd.f32 %v304_v13, %v217_v8  ;;  %v376_v16 = vadd.f32 %v375_v14, %v217_v8 }
  0xd9   : > { %379 = vst [vmem:[%s208_s27 + $0x8] sm:$0xff] %v305_v15  ;;  %381 = vst [vmem:[%s208_s27 + $0x18] sm:$0xff] %v376_v16 }
  0xda PF: > { %s13_s14 = sadd.s32 1, %s539_s14   ;;  %s606_s12 = smov %s535_s13 }
  0xdb   : > { %p10_p5 = scmp.ge.s32.totalorder %s13_s14, 4   ;;  %s607_s13 = smov %s609_s15 }
  0xdd   :  { %12 = sbr.rel (!%p10_p5) target bundleno = 2 (0x2), region = 62 }

</bundles_post_ra>
